<compile_context>
chip_gen: v7x
topology: tpu7x:2x2x1
jax: 0.10.0
libtpu: 0.0.40
codegen_flags: <defaults>
</compile_context>

<pallas_src>
import functools

import jax
import jax.numpy as jnp
from jax import lax
from jax.experimental import pallas as pl
from jax.experimental.pallas import tpu as pltpu


def _floordiv_const(x, d, max_val):
    """x // d for int32 x in [0, max_val] via multiply+shift (no vector int div)."""
    if d == 1:
        return x
    if d & (d - 1) == 0:
        return x >> (d.bit_length() - 1)
    s = (max_val * d).bit_length()
    m = -((-(1 << s)) // d)               # ceil(2**s / d)
    e = m * d - (1 << s)
    assert 0 <= e < d and max_val * e < (1 << s), (d, max_val)
    assert max_val * m < (1 << 31), (d, max_val)
    return (x * m) >> s


def _bottleneck_kernel(x_ref, w1_ref, w2_ref, w3d_ref, b_ref, o_ref, *,
                       NB, Hph, Wph):
    width, C = w1_ref.shape
    E = NB * Hph * Wph            # extended output positions per grid step
    L = 4 * E                     # packed (4 stride-2 phases) pixels per step

    x = x_ref[0]                  # (C, L) bf16 : channels on sublanes, pixels on lanes
    b = b_ref[...]                # (2*width + C, 1) f32
    b1, b2, b3d = b[:width], b[width:2 * width], b[2 * width:]

    # ---- conv1 (1x1) + bn1 + relu: one MXU matmul, lane-dense N = L ----------
    h1 = jnp.dot(w1_ref[...], x, preferred_element_type=jnp.float32)   # (width, L)
    h1 = jnp.maximum(h1 + b1, 0.0)

    # ---- re-zero conv2's zero-padding pixels (in-kernel iota mask) ------------
    # lane l = ((phase*NB + n)*Hph + r)*Wph + c ; pad pixels are
    # (phase<2, r==0), (phase>=2, r==Hph-1), (phase even, c==0), (phase odd, c==Wph-1)
    lane = lax.broadcasted_iota(jnp.int32, (1, L), 1)
    rowg = _floordiv_const(lane, Wph, L - 1)
    col = lane - rowg * Wph
    r = rowg - Hph * _floordiv_const(rowg, Hph, 4 * NB * Hph - 1)
    phase = _floordiv_const(lane, E, L - 1)
    bad = (((phase < 2) & (r == 0))
           | ((phase >= 2) & (r == Hph - 1))
           | (((phase & 1) == 0) & (col == 0))
           | (((phase & 1) == 1) & (col == Wph - 1)))
    x1 = jnp.where(bad, 0.0, h1).astype(jnp.bfloat16)                  # (width, L)

    # ---- conv2 (3x3, stride 2, pad 1) + bn2 + relu ----------------------------
    # every tap is one CONTIGUOUS lane slice of the phase-major packing; the 9
    # taps stack along sublanes into a single (9*width, E) operand -> one matmul.
    taps = []
    for kh in range(3):
        pr, oh = kh & 1, kh >> 1
        for kw in range(3):
            pc, ow = kw & 1, kw >> 1
            base = (2 * pr + pc) * E + oh * Wph + ow
            taps.append(x1[:, base:base + E])
    cat = jnp.concatenate(taps, axis=0)                                # (9*width, E)
    h2 = jnp.dot(w2_ref[...], cat, preferred_element_type=jnp.float32) # (width, E)
    h2 = jnp.maximum(h2 + b2, 0.0).astype(jnp.bfloat16)

    # ---- conv3 + bn3 fused with the downsample conv1x1/s2 + bn (one matmul) ---
    # downsample input == phase-3 block of the raw packed x (already bf16).
    xd = x[:, 3 * E:4 * E]                                             # (C, E)
    rhs = jnp.concatenate([h2, xd], axis=0)                            # (width+C, E)
    out = jnp.dot(w3d_ref[...], rhs, preferred_element_type=jnp.float32) + b3d

    # ---- residual already included; final relu, lane-dense store --------------
    o_ref[0] = jnp.maximum(out, 0.0).astype(o_ref.dtype)               # (C, E)


def init_params(key, C):
    """Conv weights with inference-mode BatchNorm folded in, pre-transposed /
    pre-stacked for the channels-on-sublanes kernel layout; MXU weights bf16."""
    width = 2 * C
    eps = 1e-5
    ks = jax.random.split(key, 8)

    def bn(k, ch):
        gamma = jax.random.uniform(k, (ch,), jnp.float32, 0.5, 1.5)
        beta = jax.random.uniform(jax.random.fold_in(k, 1), (ch,),
                                  jnp.float32, -0.5, 0.5)
        return gamma / jnp.sqrt(1.0 + eps), beta   # running_mean=0, running_var=1

    w1 = jax.random.normal(ks[0], (C, width), jnp.float32) * 0.2            # (in, out)
    w2 = jax.random.normal(ks[1], (3, 3, width, width), jnp.float32) * 0.1  # HWIO
    w3 = jax.random.normal(ks[2], (width, C), jnp.float32) * 0.2
    wd = jax.random.normal(ks[3], (C, C), jnp.float32) * 0.2
    s1, b1 = bn(ks[4], width)
    s2, b2 = bn(ks[5], width)
    s3, b3 = bn(ks[6], C)
    sd, bd = bn(ks[7], C)

    w1t = (w1 * s1[None, :]).T                                     # (width, C)
    w2f = w2 * s2[None, None, None, :]
    w2t = w2f.transpose(3, 0, 1, 2).reshape(width, 9 * width)      # (width, 9*width)
    w3t = (w3 * s3[None, :]).T                                     # (C, width)
    wdt = (wd * sd[None, :]).T                                     # (C, C)
    return dict(
        w1t=w1t.astype(jnp.bfloat16),
        w2t=w2t.astype(jnp.bfloat16),
        w3dt=jnp.concatenate([w3t, wdt], axis=1).astype(jnp.bfloat16),   # (C, width+C)
        b_all=jnp.concatenate([b1, b2, b3 + bd]).reshape(-1, 1),         # (2w+C, 1) f32
    )


@jax.jit
def bottleneck2d_forward(x, params):
    """x: (B, C, H, W) float32 (PyTorch NCHW). Stride-2 bottleneck + downsample."""
    B, C, H, W = x.shape
    assert H % 2 == 0 and W % 2 == 0
    Ho, Wo = H // 2, W // 2
    Hph, Wph = Ho + 1, Wo + 1          # stride-2 phase extents of the padded input
    width = params["w1t"].shape[0]
    # one grid step per TensorCore on v7x ('parallel'); one step total otherwise.
    grid_n = 2 if (B % 2 == 0 and B >= 2) else 1
    NB = B // grid_n
    E = NB * Hph * Wph                 # extended outputs (incl. 1 junk row/col) per step
    L = 4 * E                          # packed pixels per step
    # invariants the in-kernel border mask / tap slicing rely on:
    assert Hph == Ho + 1 and Wph == Wo + 1 and 2 * E + Wph + 1 <= L

    # ---- glue: one pad + one transpose -> phase-major packing, bf16, NCHW-free
    xb = x.astype(jnp.bfloat16)
    xp = jnp.pad(xb, ((0, 0), (0, 0), (1, 1), (1, 1)))           # (B, C, 2Hph, 2Wph)
    xs = xp.reshape(grid_n, NB, C, Hph, 2, Wph, 2).transpose(0, 2, 4, 6, 1, 3, 5)
    x_packed = xs.reshape(grid_n, C, L)                          # lanes = (phase,n,r,c)

    kernel = functools.partial(_bottleneck_kernel, NB=NB, Hph=Hph, Wph=Wph)

    flops = 2 * grid_n * (width * C * L + 9 * width * width * E
                          + C * (width + C) * E)
    bytes_accessed = (x_packed.size * 2 + grid_n * C * E * 4
                      + (params["w1t"].size + params["w2t"].size
                         + params["w3dt"].size) * 2 + params["b_all"].size * 4)

    out_packed = pl.pallas_call(
        kernel,
        out_shape=jax.ShapeDtypeStruct((grid_n, C, E), jnp.float32),
        grid=(grid_n,),
        in_specs=[
            pl.BlockSpec((1, C, L), lambda n: (n, 0, 0)),
            pl.BlockSpec((width, C), lambda n: (0, 0)),
            pl.BlockSpec((width, 9 * width), lambda n: (0, 0)),
            pl.BlockSpec((C, width + C), lambda n: (0, 0)),
            pl.BlockSpec((2 * width + C, 1), lambda n: (0, 0)),
        ],
        out_specs=pl.BlockSpec((1, C, E), lambda n: (n, 0, 0)),
        compiler_params=pltpu.CompilerParams(
            dimension_semantics=("parallel",)),
        cost_estimate=pl.CostEstimate(flops=flops, transcendentals=0,
                                      bytes_accessed=bytes_accessed),
    )(x_packed, params["w1t"], params["w2t"], params["w3dt"], params["b_all"])

    # (grid, C, NB*Hph*Wph) -> drop the junk row/col -> (B, C, Ho, Wo)
    out = out_packed.reshape(grid_n, C, NB, Hph, Wph)[:, :, :, :Ho, :Wo]
    return out.transpose(0, 2, 1, 3, 4).reshape(B, C, Ho, Wo)


def ref_forward(x, params):
    """Pure-JAX reference (lax convs) on the same bf16-rounded data/weights."""
    B, C, H, W = x.shape
    width = params["w1t"].shape[0]
    w1 = params["w1t"].astype(jnp.float32).T.reshape(1, 1, C, width)
    w2 = params["w2t"].astype(jnp.float32).reshape(width, 3, 3, width)
    w2 = w2.transpose(1, 2, 3, 0)                                    # HWIO
    w3 = params["w3dt"][:, :width].astype(jnp.float32).T.reshape(1, 1, width, C)
    wd = params["w3dt"][:, width:].astype(jnp.float32).T.reshape(1, 1, C, C)
    b = params["b_all"][:, 0]
    b1, b2, b3d = b[:width], b[width:2 * width], b[2 * width:]

    xb = jnp.transpose(x, (0, 2, 3, 1)).astype(jnp.bfloat16).astype(jnp.float32)
    dn = ("NHWC", "HWIO", "NHWC")
    h = lax.conv_general_dilated(xb, w1, (1, 1), ((0, 0), (0, 0)),
                                 dimension_numbers=dn)
    h = jnp.maximum(h + b1, 0.0).astype(jnp.bfloat16).astype(jnp.float32)
    h = lax.conv_general_dilated(h, w2, (2, 2), ((1, 1), (1, 1)),
                                 dimension_numbers=dn)
    h = jnp.maximum(h + b2, 0.0).astype(jnp.bfloat16).astype(jnp.float32)
    h = lax.conv_general_dilated(h, w3, (1, 1), ((0, 0), (0, 0)),
                                 dimension_numbers=dn)
    ident = lax.conv_general_dilated(xb, wd, (2, 2), ((0, 0), (0, 0)),
                                     dimension_numbers=dn)
    out = jnp.maximum(h + ident + b3d, 0.0)
    return jnp.transpose(out, (0, 3, 1, 2))


if __name__ == "__main__":
    key = jax.random.PRNGKey(0)
    B, C, H, W = 8, 4, 16, 16
    kx, kp = jax.random.split(key)
    x = jax.random.normal(kx, (B, C, H, W), jnp.float32)
    params = init_params(kp, C)

    out = jax.block_until_ready(bottleneck2d_forward(x, params))
    assert out.shape == (B, C, H // 2, W // 2), out.shape

    ref = ref_forward(x, params)
    err = float(jnp.max(jnp.abs(out - ref)))
    assert jnp.allclose(out, ref, atol=5e-2, rtol=5e-2), f"max abs err {err}"
    print("KERNEL_OK")
</pallas_src>

<mosaic_0001>
module attributes {stable_mosaic.version = 11 : i64} {
  func.func @_bottleneck_kernel(%arg0: i32, %arg1: memref<1x4x1296xbf16, #tpu.memory_space<vmem>>, %arg2: memref<8x4xbf16, #tpu.memory_space<vmem>>, %arg3: memref<8x72xbf16, #tpu.memory_space<vmem>>, %arg4: memref<4x12xbf16, #tpu.memory_space<vmem>>, %arg5: memref<20x1xf32, #tpu.memory_space<vmem>>, %arg6: memref<1x4x324xf32, #tpu.memory_space<vmem>>) attributes {dimension_semantics = [#tpu.dimension_semantics<parallel>], iteration_bounds = array<i64: 2>, scalar_prefetch = 0 : i64, scratch_operands = 0 : i64, tpu.core_type = #tpu.core_type<tc>, window_params = [{transform_indices = @transform_0, window_bounds = array<i64: 1, 4, 1296>}, {pipeline_mode = #tpu.pipeline_mode<synchronous>, transform_indices = @transform_1, window_bounds = array<i64: 8, 4>}, {pipeline_mode = #tpu.pipeline_mode<synchronous>, transform_indices = @transform_2, window_bounds = array<i64: 8, 72>}, {pipeline_mode = #tpu.pipeline_mode<synchronous>, transform_indices = @transform_3, window_bounds = array<i64: 4, 12>}, {pipeline_mode = #tpu.pipeline_mode<synchronous>, transform_indices = @transform_4, window_bounds = array<i64: 20, 1>}, {transform_indices = @transform_5, window_bounds = array<i64: 1, 4, 324>}]} {
    %c0 = arith.constant 0 : index
    %c0_0 = arith.constant 0 : index
    %c0_1 = arith.constant 0 : index
    %0 = vector.load %arg1[%c0, %c0_0, %c0_1] : memref<1x4x1296xbf16, #tpu.memory_space<vmem>>, vector<1x4x1296xbf16>
    %1 = vector.shape_cast %0 : vector<1x4x1296xbf16> to vector<4x1296xbf16>
    %c0_2 = arith.constant 0 : index
    %c0_3 = arith.constant 0 : index
    %2 = vector.load %arg5[%c0_2, %c0_3] : memref<20x1xf32, #tpu.memory_space<vmem>>, vector<20x1xf32>
    %3 = vector.extract_strided_slice %2 {offsets = [0, 0], sizes = [8, 1], strides = [1, 1]} : vector<20x1xf32> to vector<8x1xf32>
    %4 = vector.extract_strided_slice %2 {offsets = [8, 0], sizes = [8, 1], strides = [1, 1]} : vector<20x1xf32> to vector<8x1xf32>
    %5 = vector.extract_strided_slice %2 {offsets = [16, 0], sizes = [4, 1], strides = [1, 1]} : vector<20x1xf32> to vector<4x1xf32>
    %c0_4 = arith.constant 0 : index
    %c0_5 = arith.constant 0 : index
    %6 = vector.load %arg2[%c0_4, %c0_5] : memref<8x4xbf16, #tpu.memory_space<vmem>>, vector<8x4xbf16>
    %cst = arith.constant dense<0.000000e+00> : vector<8x1296xf32>
    %7 = tpu.matmul %6, %1, %cst {dimension_numbers = #tpu.dot_dimension_numbers<[1], [0], [0], [1], [0, 0, 1, 1], [], []>} : vector<8x4xbf16>, vector<4x1296xbf16>, vector<8x1296xf32> -> vector<8x1296xf32>
    %8 = vector.broadcast %3 : vector<8x1xf32> to vector<8x1296xf32>
    %9 = arith.addf %7, %8 : vector<8x1296xf32>
    %cst_6 = arith.constant 0.000000e+00 : f32
    %10 = vector.broadcast %cst_6 : f32 to vector<8x1296xf32>
    %11 = arith.maximumf %9, %10 : vector<8x1296xf32>
    %12 = tpu.iota {dimensions = array<i32: 1>} : vector<1x1296xi32>
    %c1821_i32 = arith.constant 1821 : i32
    %13 = vector.broadcast %c1821_i32 : i32 to vector<1x1296xi32>
    %14 = arith.muli %12, %13 : vector<1x1296xi32>
    %c14_i32 = arith.constant 14 : i32
    %15 = vector.broadcast %c14_i32 : i32 to vector<1x1296xi32>
    %16 = arith.shrsi %14, %15 : vector<1x1296xi32>
    %c9_i32 = arith.constant 9 : i32
    %17 = vector.broadcast %c9_i32 : i32 to vector<1x1296xi32>
    %18 = arith.muli %16, %17 : vector<1x1296xi32>
    %19 = arith.subi %12, %18 : vector<1x1296xi32>
    %c228_i32 = arith.constant 228 : i32
    %20 = vector.broadcast %c228_i32 : i32 to vector<1x1296xi32>
    %21 = arith.muli %16, %20 : vector<1x1296xi32>
    %c11_i32 = arith.constant 11 : i32
    %22 = vector.broadcast %c11_i32 : i32 to vector<1x1296xi32>
    %23 = arith.shrsi %21, %22 : vector<1x1296xi32>
    %c9_i32_7 = arith.constant 9 : i32
    %24 = vector.broadcast %c9_i32_7 : i32 to vector<1x1296xi32>
    %25 = arith.muli %24, %23 : vector<1x1296xi32>
    %26 = arith.subi %16, %25 : vector<1x1296xi32>
    %c1619_i32 = arith.constant 1619 : i32
    %27 = vector.broadcast %c1619_i32 : i32 to vector<1x1296xi32>
    %28 = arith.muli %12, %27 : vector<1x1296xi32>
    %c19_i32 = arith.constant 19 : i32
    %29 = vector.broadcast %c19_i32 : i32 to vector<1x1296xi32>
    %30 = arith.shrsi %28, %29 : vector<1x1296xi32>
    %c2_i32 = arith.constant 2 : i32
    %31 = vector.broadcast %c2_i32 : i32 to vector<1x1296xi32>
    %32 = arith.cmpi slt, %30, %31 : vector<1x1296xi32>
    %c0_i32 = arith.constant 0 : i32
    %33 = vector.broadcast %c0_i32 : i32 to vector<1x1296xi32>
    %34 = arith.cmpi eq, %26, %33 : vector<1x1296xi32>
    %35 = arith.andi %32, %34 : vector<1x1296xi1>
    %c2_i32_8 = arith.constant 2 : i32
    %36 = vector.broadcast %c2_i32_8 : i32 to vector<1x1296xi32>
    %37 = arith.cmpi sge, %30, %36 : vector<1x1296xi32>
    %c8_i32 = arith.constant 8 : i32
    %38 = vector.broadcast %c8_i32 : i32 to vector<1x1296xi32>
    %39 = arith.cmpi eq, %26, %38 : vector<1x1296xi32>
    %40 = arith.andi %37, %39 : vector<1x1296xi1>
    %41 = arith.ori %35, %40 : vector<1x1296xi1>
    %c1_i32 = arith.constant 1 : i32
    %42 = vector.broadcast %c1_i32 : i32 to vector<1x1296xi32>
    %43 = arith.andi %30, %42 : vector<1x1296xi32>
    %c0_i32_9 = arith.constant 0 : i32
    %44 = vector.broadcast %c0_i32_9 : i32 to vector<1x1296xi32>
    %45 = arith.cmpi eq, %43, %44 : vector<1x1296xi32>
    %c0_i32_10 = arith.constant 0 : i32
    %46 = vector.broadcast %c0_i32_10 : i32 to vector<1x1296xi32>
    %47 = arith.cmpi eq, %19, %46 : vector<1x1296xi32>
    %48 = arith.andi %45, %47 : vector<1x1296xi1>
    %49 = arith.ori %41, %48 : vector<1x1296xi1>
    %c1_i32_11 = arith.constant 1 : i32
    %50 = vector.broadcast %c1_i32_11 : i32 to vector<1x1296xi32>
    %51 = arith.andi %30, %50 : vector<1x1296xi32>
    %c1_i32_12 = arith.constant 1 : i32
    %52 = vector.broadcast %c1_i32_12 : i32 to vector<1x1296xi32>
    %53 = arith.cmpi eq, %51, %52 : vector<1x1296xi32>
    %c8_i32_13 = arith.constant 8 : i32
    %54 = vector.broadcast %c8_i32_13 : i32 to vector<1x1296xi32>
    %55 = arith.cmpi eq, %19, %54 : vector<1x1296xi32>
    %56 = arith.andi %53, %55 : vector<1x1296xi1>
    %57 = arith.ori %49, %56 : vector<1x1296xi1>
    %cst_14 = arith.constant 0.000000e+00 : f32
    %58 = vector.shape_cast %57 : vector<1x1296xi1> to vector<1x1296xi1>
    %59 = vector.broadcast %58 : vector<1x1296xi1> to vector<8x1296xi1>
    %60 = vector.broadcast %cst_14 : f32 to vector<8x1296xf32>
    %61 = arith.select %59, %60, %11 : vector<8x1296xi1>, vector<8x1296xf32>
    %62 = arith.truncf %61 : vector<8x1296xf32> to vector<8x1296xbf16>
    %63 = vector.extract_strided_slice %62 {offsets = [0, 0], sizes = [8, 324], strides = [1, 1]} : vector<8x1296xbf16> to vector<8x324xbf16>
    %64 = vector.extract_strided_slice %62 {offsets = [0, 324], sizes = [8, 324], strides = [1, 1]} : vector<8x1296xbf16> to vector<8x324xbf16>
    %65 = vector.extract_strided_slice %62 {offsets = [0, 1], sizes = [8, 324], strides = [1, 1]} : vector<8x1296xbf16> to vector<8x324xbf16>
    %66 = vector.extract_strided_slice %62 {offsets = [0, 648], sizes = [8, 324], strides = [1, 1]} : vector<8x1296xbf16> to vector<8x324xbf16>
    %67 = vector.extract_strided_slice %62 {offsets = [0, 972], sizes = [8, 324], strides = [1, 1]} : vector<8x1296xbf16> to vector<8x324xbf16>
    %68 = vector.extract_strided_slice %62 {offsets = [0, 649], sizes = [8, 324], strides = [1, 1]} : vector<8x1296xbf16> to vector<8x324xbf16>
    %69 = vector.extract_strided_slice %62 {offsets = [0, 9], sizes = [8, 324], strides = [1, 1]} : vector<8x1296xbf16> to vector<8x324xbf16>
    %70 = vector.extract_strided_slice %62 {offsets = [0, 333], sizes = [8, 324], strides = [1, 1]} : vector<8x1296xbf16> to vector<8x324xbf16>
    %71 = vector.extract_strided_slice %62 {offsets = [0, 10], sizes = [8, 324], strides = [1, 1]} : vector<8x1296xbf16> to vector<8x324xbf16>
    %72 = tpu.concatenate %63, %64, %65, %66, %67, %68, %69, %70, %71 in 0 : vector<8x324xbf16>, vector<8x324xbf16>, vector<8x324xbf16>, vector<8x324xbf16>, vector<8x324xbf16>, vector<8x324xbf16>, vector<8x324xbf16>, vector<8x324xbf16>, vector<8x324xbf16> -> vector<72x324xbf16>
    %c0_15 = arith.constant 0 : index
    %c0_16 = arith.constant 0 : index
    %73 = vector.load %arg3[%c0_15, %c0_16] : memref<8x72xbf16, #tpu.memory_space<vmem>>, vector<8x72xbf16>
    %cst_17 = arith.constant dense<0.000000e+00> : vector<8x324xf32>
    %74 = tpu.matmul %73, %72, %cst_17 {dimension_numbers = #tpu.dot_dimension_numbers<[1], [0], [0], [1], [0, 0, 1, 1], [], []>} : vector<8x72xbf16>, vector<72x324xbf16>, vector<8x324xf32> -> vector<8x324xf32>
    %75 = vector.broadcast %4 : vector<8x1xf32> to vector<8x324xf32>
    %76 = arith.addf %74, %75 : vector<8x324xf32>
    %cst_18 = arith.constant 0.000000e+00 : f32
    %77 = vector.broadcast %cst_18 : f32 to vector<8x324xf32>
    %78 = arith.maximumf %76, %77 : vector<8x324xf32>
    %79 = arith.truncf %78 : vector<8x324xf32> to vector<8x324xbf16>
    %80 = vector.extract_strided_slice %1 {offsets = [0, 972], sizes = [4, 324], strides = [1, 1]} : vector<4x1296xbf16> to vector<4x324xbf16>
    %81 = tpu.concatenate %79, %80 in 0 : vector<8x324xbf16>, vector<4x324xbf16> -> vector<12x324xbf16>
    %c0_19 = arith.constant 0 : index
    %c0_20 = arith.constant 0 : index
    %82 = vector.load %arg4[%c0_19, %c0_20] : memref<4x12xbf16, #tpu.memory_space<vmem>>, vector<4x12xbf16>
    %cst_21 = arith.constant dense<0.000000e+00> : vector<4x324xf32>
    %83 = tpu.matmul %82, %81, %cst_21 {dimension_numbers = #tpu.dot_dimension_numbers<[1], [0], [0], [1], [0, 0, 1, 1], [], []>} : vector<4x12xbf16>, vector<12x324xbf16>, vector<4x324xf32> -> vector<4x324xf32>
    %84 = vector.broadcast %5 : vector<4x1xf32> to vector<4x324xf32>
    %85 = arith.addf %83, %84 : vector<4x324xf32>
    %cst_22 = arith.constant 0.000000e+00 : f32
    %86 = vector.broadcast %cst_22 : f32 to vector<4x324xf32>
    %87 = arith.maximumf %85, %86 : vector<4x324xf32>
    %c0_23 = arith.constant 0 : index
    %c0_24 = arith.constant 0 : index
    %c0_25 = arith.constant 0 : index
    %88 = vector.load %arg6[%c0_23, %c0_24, %c0_25] : memref<1x4x324xf32, #tpu.memory_space<vmem>>, vector<1x4x324xf32>
    %89 = vector.shape_cast %88 : vector<1x4x324xf32> to vector<4x324xf32>
    %90 = vector.shape_cast %87 : vector<4x324xf32> to vector<1x4x324xf32>
    tpu.vector_store %arg6[%c0_23, %c0_24, %c0_25], %90 {strides = array<i32>} : memref<1x4x324xf32, #tpu.memory_space<vmem>>, vector<1x4x324xf32>,
    return
  }
  func.func @transform_0(%arg0: i32) -> (i32, i32, i32) {
    %c0_i32 = arith.constant 0 : i32
    %c0_i32_0 = arith.constant 0 : i32
    %c0_i32_1 = arith.constant 0 : i32
    return %arg0, %c0_i32, %c0_i32_0 : i32, i32, i32
  }
  func.func @transform_1(%arg0: i32) -> (i32, i32) {
    %c0_i32 = arith.constant 0 : i32
    %c0_i32_0 = arith.constant 0 : i32
    %c0_i32_1 = arith.constant 0 : i32
    return %c0_i32, %c0_i32_0 : i32, i32
  }
  func.func @transform_2(%arg0: i32) -> (i32, i32) {
    %c0_i32 = arith.constant 0 : i32
    %c0_i32_0 = arith.constant 0 : i32
    %c0_i32_1 = arith.constant 0 : i32
    return %c0_i32, %c0_i32_0 : i32, i32
  }
  func.func @transform_3(%arg0: i32) -> (i32, i32) {
    %c0_i32 = arith.constant 0 : i32
    %c0_i32_0 = arith.constant 0 : i32
    %c0_i32_1 = arith.constant 0 : i32
    return %c0_i32, %c0_i32_0 : i32, i32
  }
  func.func @transform_4(%arg0: i32) -> (i32, i32) {
    %c0_i32 = arith.constant 0 : i32
    %c0_i32_0 = arith.constant 0 : i32
    %c0_i32_1 = arith.constant 0 : i32
    return %c0_i32, %c0_i32_0 : i32, i32
  }
  func.func @transform_5(%arg0: i32) -> (i32, i32, i32) {
    %c0_i32 = arith.constant 0 : i32
    %c0_i32_0 = arith.constant 0 : i32
    %c0_i32_1 = arith.constant 0 : i32
    return %arg0, %c0_i32, %c0_i32_0 : i32, i32, i32
  }
}

</mosaic_0001>

<bundles_post_ra>
// kernel: bottleneck2d_forward.1
= control target key start
LH: loop header
LB: loop body
LE: loop exit
PB: predicated region body
PF: predicated region fallthrough
CT: control target
= control target key end

     0   :  { %s1501_s18 = smov 0   ;;  %s2472_s0 = inlined_call_operand.vmem [shape: bf16[2,4,1296], index: 0, kind: input, shape index: {}]   ;;  %s2473_s1 = inlined_call_operand.vmem [shape: bf16[8,4], index: 1, kind: input, shape index: {}]   ;;  %s2474_s2 = inlined_call_operand.vmem [shape: bf16[8,72], index: 2, kind: input, shape index: {}]   ;;  %s2475_s3 = inlined_call_operand.vmem [shape: bf16[4,12], index: 3, kind: input, shape index: {}]   ;;  %s2476_s4 = inlined_call_operand.vmem [shape: f32[20,1], index: 4, kind: input, shape index: {}]   ;;  %s2477_s5 = inlined_call_operand.vmem [shape: f32[2,4,324], index: 5, kind: output, shape index: {}]  }
   0x1 LB: > { %s1364_s19 = sadd.s32 4294967295, %s1458_s18   ;;  %p1368_p0 = scmp.ge.s32.totalorder %s1458_s18, 1  ;;  %s1458_s18 = sphi %s1501_s18, %s15_s18  }
   0x2   : > { %p187_p1 = scmp.lt.s32.totalorder %s1458_s18, 3 }
   0x4   : > { %p188_p2 = pnand %p1368_p0, %p187_p1 }
   0x5   : > { %p215_p3 = scmp.lt.s32.totalorder (!%p188_p2), %s1364_s19, 1  ;;  %v245_v0 = vlaneseq (!%p188_p2)  ;;  %v229_v1 = vld [vmem:[%s2476_s4] sm:$0xff] (!%p188_p2)  ;;  %v1460_v2 = vmov (!%p188_p2), 1983009808   ;;  %v1461_v4 = vmov (!%p188_p2), 0   ;;  %vm295_vm0 = vcmask (!%p188_p2), 1041408  }
   0x6   : > { %191 = sbr.rel (%p188_p2) target bundleno = 861 (0x35d), region = 40  ;;  %v243_v3 = vunpack.c.l.s4 (!%p188_p2), %v1460_v2  ;;  %361 = vmatprep.mubr.bf16.mxu0 (!%p188_p2), %v1461_v4  ;;  %402 = vmatprep.mubr.bf16.mxu1 (!%p188_p2), %v1461_v4  ;;  %v232_v24 = vld [vmem:[%s2473_s1] sm:$0xf] (!%p188_p2)  ;;  %vm291_vm1 = vcmask (!%p188_p2), 31744   ;;  %v1462_v29 = vmov (!%p188_p2), 0.0   ;;  %vm2478_vm2 = vmmov (!%p188_p2), 0  }
   0x7   : > { %v246_v5 = vshrl.u32 (!%p188_p2), %v245_v0, 7  ;;  %1447 = vset.pattern.permute.xlu0 (!%p188_p2), %v1461_v4  ;;  %1448 = vset.pattern.permute.xlu1 (!%p188_p2), %v1461_v4  ;;  %v1567_v33 = vand.u32 (!%p188_p2), 127, %v245_v0  ;;  %s1464_s28 = smov (!%p188_p2), 127   ;;  %s1465_s29 = smov (!%p188_p2), 119  }
   0x8   : > { %v244_v6 = vunpack.c.0.s8 (!%p188_p2), %v243_v3  ;;  %235 = vperm.xlu0 (!%p188_p2), %1447, %v229_v1   ;;  %s1466_s30 = smov (!%p188_p2), 60   ;;  %s1467_s6 = smov (!%p188_p2), 51  }
   0x9   : > { %v587_v34 = vadd.s32 (!%p188_p2), 128, %v1567_v33  ;;  %v597_v35 = vmul.u32 (!%p188_p2), 1821, %v1567_v33  ;;  %v588_v36 = vadd.s32 (!%p188_p2), 256, %v1567_v33  ;;  %v1573_v40 = vadd.s32 (!%p188_p2), 384, %v1567_v33  ;;  %s1468_s7 = smov (!%p188_p2), 120   ;;  %s1469_s8 = smov (!%p188_p2), 52  }
   0xa   : > { %v247_v7 = vsub.s32 (!%p188_p2), %v244_v6, %v246_v5  ;;  %v1577_v45 = vadd.s32 (!%p188_p2), 512, %v1567_v33  ;;  %v685_v48 = vmul.u32 (!%p188_p2), 1619, %v1567_v33  ;;  %v1584_v54 = vadd.s32 (!%p188_p2), 640, %v1567_v33  ;;  %s1470_s9 = smov (!%p188_p2), 118  }
   0xb   : > { %v598_v37 = vmul.u32 (!%p188_p2), 1821, %v587_v34  ;;  %v608_v38 = vshra.s32 (!%p188_p2), %v597_v35, 14  ;;  %v599_v39 = vmul.u32 (!%p188_p2), 1821, %v588_v36  ;;  %v1592_v60 = vadd.s32 (!%p188_p2), 768, %v1567_v33 }
   0xc   : > { %v600_v44 = vmul.u32 (!%p188_p2), 1821, %v1573_v40  ;;  %v601_v51 = vmul.u32 (!%p188_p2), 1821, %v1577_v45  ;;  %v1586_v55 = vshra.s32 (!%p188_p2), %v685_v48, 19  ;;  %v2559_v48 = vmov (!%p188_p2), 0 }
   0xd   : > { %s2752_s19 = smov (!%p215_p3, %s1364_s19), 1  ;;  %v609_v41 = vshra.s32 %v598_v37, 14  ;;  %v641_v42 = vmul.u32 228, %v608_v38  ;;  %v610_v43 = vshra.s32 %v599_v39, 14  ;;  %v686_v57 = vmul.u32 1619, %v587_v34 }
   0xe   : > { %s1426_s22 = smul.u32 22, %s2752_s19  ;;  %v1580_v50 = vshra.s32 %v600_v44, 14  ;;  %v1589_v59 = vshra.s32 %v601_v51, 14  ;;  %v619_v61 = vmul.u32 9, %v608_v38  ;;  %v602_v1 = vmul.u32 1821, %v1584_v54 }
   0xf   : > { %v642_v46 = vmul.u32 228, %v609_v41  ;;  %v652_v47 = vshra.s32 %v641_v42, 11  ;;  %v643_v49 = vmul.u32 228, %v610_v43  ;;  %v784_v2 = vand.u32 1, %v1586_v55  ;;  %s1427_s20 = smul.u32 12, %s2752_s19 }
  0x10   : > { %s219_s25 = scalar_lea.vmem %s2472_s0, %s1426_s22  ;;  %v644_v58 = vmul.u32 228, %v1580_v50  ;;  %v620_v0 = vmul.u32 9, %v609_v41  ;;  %v1596_v6 = vshra.s32 %v686_v57, 19  ;;  %vm707_vm3 = vcmp.lt.s32.totalorder %v1586_v55, 2 }
  0x11   : > { %v226_v8 = vld [vmem:[%s219_s25] sm:$0xff]  ;;  %v227_v9 = vld [vmem:[%s219_s25 + $0x8] sm:$0xff]  ;;  %v228_v10 = vld [vmem:[%s219_s25 + $0x10] sm:$0x3f]  ;;  %v653_v52 = vshra.s32 %v642_v46, 11  ;;  %v663_v53 = vmul.u32 9, %v652_v47  ;;  %s224_s23 = scalar_lea.vmem %s2477_s5, %s1427_s20 }
  0x12   : > { %v248_v11 = vrot.slane %v226_v8, %v247_v7  ;;  %v258_v12 = vcombine.high %v227_v9, %v227_v9  ;;  %v241_v13 = vcombine.high %v226_v8, %v226_v8  ;;  %v1523_v14 = vrot.slane %v228_v10, %v247_v7 }
  0x13   : > { %v265_v15 = vrot.slane %v227_v9, %v247_v7  ;;  %v275_v28 = vcombine.high %v228_v10, %v228_v10  ;;  %v654_v56 = vshra.s32 %v643_v49, 11  ;;  %v664_v62 = vmul.u32 9, %v653_v52 }
  0x14   : > { %v256_v16 = vcombine.high %v248_v11, %v248_v11  ;;  %v297_v17 = vsel %vm295_vm0, %v248_v11, 0  ;;  %v255_v18 = vrot.slane %v241_v13, %v247_v7  ;;  %v1526_v19 = vrot.slane %v258_v12, %v247_v7 }
  0x15   : > { %v273_v20 = vcombine.high %v265_v15, %v265_v15  ;;  %v309_v25 = vsel %vm295_vm0, %v265_v15, 0  ;;  %v290_v26 = vcombine.high %v1523_v14, %v1523_v14  ;;  %v1549_v30 = vrot.slane %v275_v28, %v247_v7 }
  0x16   : > { %1371 = vmatprep.subr.msk.bf16.mxu0 %vm295_vm0, %v256_v16  ;;  %v257_v21 = vcombine.high %v255_v18, %v255_v18  ;;  %v303_v22 = vsel %vm295_vm0, %v255_v18, 0  ;;  %v274_v23 = vcombine.high %v1526_v19, %v1526_v19  ;;  %v315_v27 = vsel %vm295_vm0, %v1526_v19, 0 }
  0x17   : > { %330 = vmatpush1.bf16.msra.mxu0 %v297_v17  ;;  %v321_v31 = vsel %vm295_vm0, %v1523_v14, 0  ;;  %v327_v32 = vsel %vm295_vm0, %v1549_v30, 0  ;;  %v674_v63 = vsub.s32 %v608_v38, %v663_v53  ;;  %v665_v3 = vmul.u32 9, %v654_v56 }
  0x18   : > { %1373 = vmatprep.subr.msk.bf16.mxu1 %vm295_vm0, %v257_v21  ;;  %1375 = vmatprep.subr.msk.bf16.mxu0 %vm295_vm0, %v273_v20  ;;  %v687_v5 = vmul.u32 1619, %v588_v36  ;;  %v655_v7 = vshra.s32 %v644_v58, 11  ;;  %v645_v8 = vmul.u32 228, %v1589_v59  ;;  %v1601_v10 = vsub.s32 %v1567_v33, %v619_v61 }
  0x19   : > { %371 = vmatpush1.bf16.msra.mxu1 %v303_v22  ;;  %v603_v9 = vmul.u32 1821, %v1592_v60  ;;  %v675_v11 = vsub.s32 %v609_v41, %v664_v62  ;;  %v621_v12 = vmul.u32 9, %v610_v43  ;;  %vm718_vm4 = vcmp.eq.s32.totalorder %v674_v63, 0 }
  0x1a   : > { %1372 = vmatmul.mubr.msk.bf16.vlgmr.msra.gmra.mrb[0].mxu0 %vm291_vm1, %v232_v24  ;;  %1377 = vmatprep.subr.msk.bf16.mxu1 %vm295_vm0, %v274_v23  ;;  %vm740_vm5 = vcmp.ge.s32.totalorder %v1586_v55, 2  ;;  %v1605_v13 = vshra.s32 %v602_v1, 14  ;;  %v1608_v15 = vadd.s32 896, %v1567_v33  ;;  %vm751_vm6 = vcmp.eq.s32.totalorder %v674_v63, 8  ;;  %vm1627_vm12 = vmand %vm707_vm3, %vm718_vm4 }
  0x1b   : > { %412 = vmatpush1.bf16.msra.mxu0 %v309_v25  ;;  %443 = vmatprep.mubr.bf16.mxu0 %v1461_v4  ;;  %vm1610_vm7 = vcmp.eq.s32.totalorder %v784_v2, 0  ;;  %v1614_v17 = vsub.s32 %v587_v34, %v620_v0  ;;  %v676_v18 = vsub.s32 %v610_v43, %v665_v3  ;;  %vm708_vm8 = vcmp.lt.s32.totalorder %v1596_v6, 2  ;;  %vm1638_vm14 = vmand %vm740_vm5, %vm751_vm6 }
  0x1c   : > { %1374 = vmatmul.mubr.msk.bf16.vlgmr.msra.gmra.mrb[0].mxu1 %vm291_vm1, %v232_v24  ;;  %1379 = vmatprep.subr.msk.bf16.mxu0 %vm295_vm0, %v290_v26  ;;  %v698_v20 = vshra.s32 %v687_v5, 19  ;;  %v656_v21 = vshra.s32 %v645_v8, 11  ;;  %v1617_v22 = vshra.s32 %v603_v9, 14  ;;  %vm719_vm9 = vcmp.eq.s32.totalorder %v675_v11, 0 }
  0x1d   : > { %453 = vmatpush1.bf16.msra.mxu1 %v315_v27  ;;  %484 = vmatprep.mubr.bf16.mxu1 %v1461_v4  ;;  %vm741_vm10 = vcmp.ge.s32.totalorder %v1596_v6, 2  ;;  %v666_v23 = vmul.u32 9, %v655_v7  ;;  %vm752_vm11 = vcmp.eq.s32.totalorder %v675_v11, 8  ;;  %v785_v25 = vand.u32 1, %v1596_v6  ;;  %vm1649_vm0 = vmand %vm708_vm8, %vm719_vm9 }
  0x1e   : > { %1400 = vmatprep.subr.bf16.mxu1 %v1462_v29  ;;  %v646_v26 = vmul.u32 228, %v1605_v13  ;;  %v604_v27 = vmul.u32 1821, %v1608_v15  ;;  %vm720_vm13 = vcmp.eq.s32.totalorder %v676_v18, 0  ;;  %vm709_vm15 = vcmp.lt.s32.totalorder %v698_v20, 2  ;;  %vm1659_vm5 = vmand %vm741_vm10, %vm752_vm11 }
  0x1f   : > { %v689_v34 = vmul.u32 1619, %v1577_v45  ;;  %v667_v37 = vmul.u32 9, %v656_v21  ;;  %v1644_v39 = vadd.s32 1024, %v1567_v33  ;;  %vm753_vm3 = vcmp.eq.s32.totalorder %v676_v18, 8  ;;  %vm1673_vm9 = vmand %vm709_vm15, %vm720_vm13 }
  0x20   : > { %v647_v38 = vmul.u32 228, %v1617_v22  ;;  %v786_v41 = vand.u32 1, %v698_v20  ;;  %vm806_vm4 = vcmp.eq.s32.totalorder %v1601_v10, 0  ;;  %v2516_v43 = vmov 0 }
  0x21   : > { %v2517_v43 = vsel %vm1659_vm5, 4294967295, %v2516_v43  ;;  %v677_v44 = vsub.s32 %v1580_v50, %v666_v23  ;;  %v657_v46 = vshra.s32 %v646_v26, 11  ;;  %v1664_v47 = vshra.s32 %v604_v27, 14  ;;  %vm1709_vm13 = vmand %vm1610_vm7, %vm806_vm4 }
  0x22   : > { %1376 = vmatmul.mubr.msk.bf16.vlgmr.msra.gmra.mrb[4].mxu0 %vm291_vm1, %v232_v24  ;;  %vm1666_vm6 = vcmp.eq.s32.totalorder %v785_v25, 0  ;;  %vm807_vm8 = vcmp.eq.s32.totalorder %v1614_v17, 0  ;;  %v2520_v49 = vmov 0  ;;  %v678_v52 = vsub.s32 %v1589_v59, %v667_v37 }
  0x23   : > { %494 = vmatpush1.bf16.msra.mxu0 %v321_v31  ;;  %525 = vmatprep.mubr.bf16.mxu0 %v1461_v4  ;;  %v1631_v31 = vsub.s32 %v588_v36, %v621_v12  ;;  %v2514_v36 = vmov 0  ;;  %v2521_v49 = vsel %vm1673_vm9, 4294967295, %v2520_v49  ;;  %v1686_v53 = vshra.s32 %v689_v34, 19 }
  0x24   : > { %1378 = vmatmul.mubr.msk.bf16.vlgmr.msra.gmra.mrb[4].mxu1 %vm291_vm1, %v232_v24  ;;  %v2515_v36 = vsel %vm1649_vm0, 4294967295, %v2514_v36  ;;  %v658_v55 = vshra.s32 %v647_v38, 11  ;;  %v605_v56 = vmul.u32 1821, %v1644_v39  ;;  %vm1693_vm15 = vcmp.eq.s32.totalorder %v784_v2, 1 }
  0x25   : > { %1401 = vmatpush3.bf16.msra.mxu1 %v327_v32  ;;  %1402 = vmatprep.mubr.msk.bf16.mxu1 %vm2478_vm2, %v1462_v29  ;;  %v622_v32 = vmul.u32 9, %v1580_v50  ;;  %v2522_v50 = vmov 0  ;;  %v2524_v57 = vmov 0  ;;  %v623_v58 = vmul.u32 9, %v1589_v59 }
  0x26   : > { %1406 = vmatprep.subr.bf16.mxu1 %v1462_v29  ;;  %v2525_v57 = vsel %vm1693_vm15, 4294967295, %v2524_v57  ;;  %v690_v61 = vmul.u32 1619, %v1584_v54  ;;  %v668_v63 = vmul.u32 9, %v657_v46  ;;  %vm1723_vm15 = vmand %vm1666_vm6, %vm807_vm8  ;;  %vm1727_vm7 = vcmp.eq.s32.totalorder %v785_v25, 1 }
  0x27   : > { %v1679_v51 = vsub.s32 %v1573_v40, %v622_v32  ;;  %v648_v0 = vmul.u32 228, %v1664_v47  ;;  %v2532_v1 = vmov 0  ;;  %v2534_v2 = vmov 0 }
  0x28   : > { %v2533_v1 = vsel %vm1727_vm7, 4294967295, %v2532_v1  ;;  %vm754_vm8 = vcmp.eq.s32.totalorder %v677_v44, 8  ;;  %v691_v5 = vmul.u32 1619, %v1592_v60  ;;  %vm2536_vm10 = vcmp.eq.s32.totalorder %v1631_v31, 0 }
  0x29   : > { %v2537_v6 = vmov 0  ;;  %v669_v7 = vmul.u32 9, %v658_v55  ;;  %v1752_v8 = vshra.s32 %v605_v56, 14  ;;  %vm2539_vm6 = vcmp.eq.s32.totalorder %v677_v44, 0 }
  0x2a   : > { %1380 = vmatmul.mubr.msk.bf16.vlgmr.msra.gmra.mrb[8].mxu0 %vm291_vm1, %v232_v24  ;;  %v1762_v11 = vsub.s32 %v1577_v45, %v623_v58  ;;  %v788_v12 = vand.u32 1, %v1686_v53  ;;  %v679_v18 = vsub.s32 %v1605_v13, %v668_v63  ;;  %v659_v21 = vshra.s32 %v648_v0, 11 }
  0x2b   : > { %1124 = vmatprep.mubr.bf16.mxu0 %v1461_v4  ;;  %v1776_v23 = vadd.s32 1152, %v1567_v33  ;;  %v624_v25 = vmul.u32 9, %v1605_v13  ;;  %v2552_v26 = vmov 0  ;;  %v680_v27 = vsub.s32 %v1617_v22, %v669_v7 }
  0x2c   : > { %1403 = vmatmul.mubr.msk.bf16.vlgmr.msra.gmra.mrb[8].mxu1 %vm291_vm1, %v232_v24  ;;  %v688_v24 = vmul.u32 1619, %v1573_v40  ;;  %vm742_vm1 = vcmp.ge.s32.totalorder %v698_v20, 2  ;;  %v1773_v20 = vshra.s32 %v690_v61, 19  ;;  %v1797_v32 = vshra.s32 %v691_v5, 19 }
  0x2d   : > { %1416 = vmatprep.mubr.msk.bf16.mxu1 %vm2478_vm2, %v1462_v29  ;;  %vm1681_vm11 = vmand %vm742_vm1, %vm753_vm3  ;;  %vm1698_vm3 = vcmp.eq.s32.totalorder %v786_v41, 0  ;;  %vm1736_vm2 = vcmp.eq.s32.totalorder %v786_v41, 1  ;;  %v649_v34 = vmul.u32 228, %v1752_v8  ;;  %v1801_v37 = vadd.s32 1280, %v1567_v33 }
  0x2e   : > { %v1653_v42 = vshra.s32 %v688_v24, 19  ;;  %v2523_v50 = vsel %vm1681_vm11, 4294967295, %v2522_v50  ;;  %v2535_v2 = vsel %vm1736_vm2, 4294967295, %v2534_v2  ;;  %vm1747_vm4 = vmand %vm1698_vm3, %vm2536_vm10  ;;  %vm744_vm10 = vcmp.ge.s32.totalorder %v1686_v53, 2 }
  0x2f   : > { %v2538_v6 = vsel %vm1747_vm4, 4294967295, %v2537_v6  ;;  %vm755_vm3 = vcmp.eq.s32.totalorder %v678_v52, 8  ;;  %v2550_v24 = vmov 0  ;;  %v625_v38 = vmul.u32 9, %v1617_v22 }
  0x30   : > { %v787_v3 = vand.u32 1, %v1653_v42  ;;  %vm2540_vm2 = vcmp.lt.s32.totalorder %v1653_v42, 2  ;;  %vm2543_vm1 = vcmp.ge.s32.totalorder %v1653_v42, 2  ;;  %vm1792_vm5 = vmand %vm744_vm10, %vm755_vm3  ;;  %v692_v41 = vmul.u32 1619, %v1608_v15 }
  0x31   : > { %vm1757_vm9 = vmand %vm2540_vm2, %vm2539_vm6  ;;  %vm809_vm6 = vcmp.eq.s32.totalorder %v1679_v51, 0  ;;  %v2553_v26 = vsel %vm1792_vm5, 4294967295, %v2552_v26  ;;  %v670_v42 = vmul.u32 9, %v659_v21  ;;  %v606_v44 = vmul.u32 1821, %v1776_v23 }
  0x32   : > { %vm1768_vm11 = vmand %vm2543_vm1, %vm754_vm8  ;;  %vm1778_vm2 = vcmp.eq.s32.totalorder %v787_v3, 0  ;;  %vm2548_vm1 = vcmp.eq.s32.totalorder %v678_v52, 0  ;;  %vm2549_vm8 = vcmp.lt.s32.totalorder %v1686_v53, 2  ;;  %v1827_v22 = vsub.s32 %v1584_v54, %v624_v25 }
  0x33   : > { %vm1787_vm7 = vmand %vm2549_vm8, %vm2548_vm1  ;;  %vm1807_vm8 = vcmp.eq.s32.totalorder %v788_v12, 0  ;;  %v789_v46 = vand.u32 1, %v1773_v20  ;;  %vm2561_vm1 = vcmp.eq.s32.totalorder %v1601_v10, 8  ;;  %vm2562_vm0 = vnez %v2525_v57 }
  0x34   : > { %v2551_v24 = vsel %vm1787_vm7, 4294967295, %v2550_v24  ;;  %vm1816_vm3 = vmand %vm1778_vm2, %vm809_vm6  ;;  %v2563_v54 = vmov 0  ;;  %vm2565_vm10 = vcmp.eq.s32.totalorder %v1762_v11, 0  ;;  %v2566_v28 = vmov 0 }
  0x35   : > { %vm2558_vm6 = vmor %vm1627_vm12, %vm1638_vm14  ;;  %v660_v35 = vshra.s32 %v649_v34, 11  ;;  %v607_v10 = vmul.u32 1821, %v1801_v37  ;;  %v1868_v53 = vsub.s32 %v1592_v60, %v625_v38  ;;  %v790_v55 = vand.u32 1, %v1797_v32 }
  0x36   : > { %vm1838_vm4 = vmor %vm2558_vm6, %vm1709_vm13  ;;  %vm2568_vm13 = vcmp.eq.s32.totalorder %v679_v18, 0  ;;  %vm2572_vm6 = vnez %v2515_v36  ;;  %vm2573_vm12 = vnez %v2517_v43  ;;  %v2575_v56 = vmov 0 }
  0x37   : > { %v2560_v48 = vsel %vm1838_vm4, 4294967295, %v2559_v48  ;;  %vm1846_vm5 = vmand %vm2562_vm0, %vm2561_vm1  ;;  %vm2569_vm0 = vcmp.lt.s32.totalorder %v1773_v20, 2  ;;  %v2579_v60 = vmov 0  ;;  %vm2583_vm7 = vnez %v2523_v50 }
  0x38   : > { %v2564_v54 = vsel %vm1846_vm5, 4294967295, %v2563_v54  ;;  %vm1854_vm2 = vmand %vm1807_vm8, %vm2565_vm10  ;;  %vm2581_vm8 = vnez %v2538_v6  ;;  %vm2582_vm10 = vnez %v2521_v49  ;;  %v2585_v36 = vmov 0 }
  0x39   : > { %v2567_v28 = vsel %vm1854_vm2, 4294967295, %v2566_v28  ;;  %vm1863_vm1 = vmand %vm2569_vm0, %vm2568_vm13  ;;  %vm2577_vm13 = vcmp.eq.s32.totalorder %v1614_v17, 8  ;;  %vm2578_vm0 = vnez %v2533_v1  ;;  %v2589_v17 = vmov 0 }
  0x3a   : > { %vm2574_vm14 = vmor %vm2572_vm6, %vm2573_vm12  ;;  %v681_v49 = vsub.s32 %v1664_v47, %v670_v42  ;;  %v1918_v50 = vshra.s32 %v692_v41, 19  ;;  %v1920_v57 = vshra.s32 %v606_v44, 14  ;;  %v2599_v40 = vmov 0 }
  0x3b   : > { %vm1879_vm4 = vmor %vm2574_vm14, %vm1723_vm15  ;;  %vm2587_vm15 = vcmp.eq.s32.totalorder %v1631_v31, 8  ;;  %vm2588_vm14 = vnez %v2535_v2  ;;  %v626_v58 = vmul.u32 9, %v1664_v47  ;;  %v2603_v61 = vmov 0 }
  0x3c   : > { %v2576_v56 = vsel %vm1879_vm4, 4294967295, %v2575_v56  ;;  %vm1887_vm5 = vmand %vm2578_vm0, %vm2577_vm13  ;;  %vm842_vm13 = vcmp.eq.s32.totalorder %v787_v3, 1  ;;  %vm2591_vm0 = vcmp.eq.s32.totalorder %v679_v18, 8  ;;  %vm2592_vm4 = vcmp.ge.s32.totalorder %v1773_v20, 2 }
  0x3d   : > { %v2580_v60 = vsel %vm1887_vm5, 4294967295, %v2579_v60  ;;  %vm2584_vm2 = vmor %vm2582_vm10, %vm2583_vm7  ;;  %vm1922_vm7 = vcmp.eq.s32.totalorder %v789_v46, 0  ;;  %vm2598_vm10 = vcmp.lt.s32.totalorder %v1797_v32, 2  ;;  %v671_v62 = vmul.u32 9, %v660_v35 }
  0x3e   : > { %vm1898_vm12 = vmor %vm2584_vm2, %vm2581_vm8  ;;  %vm811_vm2 = vcmp.eq.s32.totalorder %v1827_v22, 0  ;;  %vm2597_vm8 = vcmp.eq.s32.totalorder %v680_v27, 0  ;;  %v693_v63 = vmul.u32 1619, %v1644_v39  ;;  %v1943_v0 = vshra.s32 %v607_v10, 14 }
  0x3f   : > { %v2586_v36 = vsel %vm1898_vm12, 4294967295, %v2585_v36  ;;  %vm1906_vm6 = vmand %vm2588_vm14, %vm2587_vm15  ;;  %vm2602_vm14 = vcmp.ge.s32.totalorder %v1797_v32, 2  ;;  %v2606_v47 = vmov 0  ;;  %v2609_v59 = vmov 0 }
  0x40   : > { %v2590_v17 = vsel %vm1906_vm6, 4294967295, %v2589_v17  ;;  %vm1913_vm5 = vmand %vm2592_vm4, %vm2591_vm0  ;;  %vm2601_vm4 = vcmp.eq.s32.totalorder %v680_v27, 8  ;;  %vm1962_vm12 = vcmp.eq.s32.totalorder %v788_v12, 1  ;;  %v650_v2 = vmul.u32 228, %v1920_v57 }
  0x41   : > { %vm1930_vm15 = vmand %vm2598_vm10, %vm2597_vm8  ;;  %v637_v3 = vsub.s32 %v1608_v15, %v626_v58  ;;  %vm747_vm6 = vcmp.ge.s32.totalorder %v1918_v50, 2  ;;  %v791_v5 = vand.u32 1, %v1918_v50  ;;  %v2615_v6 = vmov 0 }
  0x42   : > { %v2600_v40 = vsel %vm1930_vm15, 4294967295, %v2599_v40  ;;  %vm1938_vm0 = vmand %vm2602_vm14, %vm2601_vm4  ;;  %vm2608_vm4 = vcmp.eq.s32.totalorder %v1679_v51, 8  ;;  %v682_v7 = vsub.s32 %v1752_v8, %v671_v62  ;;  %v704_v9 = vshra.s32 %v693_v63, 19 }
  0x43   : > { %v2604_v61 = vsel %vm1938_vm0, 4294967295, %v2603_v61  ;;  %vm2605_vm8 = vmor %vm1757_vm9, %vm1768_vm11  ;;  %vm801_vm11 = vcmp.eq.s32.totalorder %v790_v55, 0  ;;  %v651_v12 = vmul.u32 228, %v1943_v0  ;;  %v2617_v16 = vmov 0 }
  0x44   : > { %vm1952_vm10 = vmor %vm2605_vm8, %vm1816_vm3  ;;  %vm812_vm3 = vcmp.eq.s32.totalorder %v1868_v53, 0  ;;  %v627_v15 = vmul.u32 9, %v1752_v8  ;;  %vm2619_vm9 = vnez %v2567_v28  ;;  %vm2620_vm0 = vnez %v2551_v24 }
  0x45   : > { %v2607_v47 = vsel %vm1952_vm10, 4294967295, %v2606_v47  ;;  %vm1958_vm14 = vmand %vm842_vm13, %vm2608_vm4  ;;  %vm714_vm4 = vcmp.lt.s32.totalorder %v1918_v50, 2  ;;  %vm725_vm10 = vcmp.eq.s32.totalorder %v681_v49, 0  ;;  %v2623_v18 = vmov 0 }
  0x46   : > { %v2610_v59 = vsel %vm1958_vm14, 4294967295, %v2609_v59  ;;  %vm1974_vm13 = vmand %vm1922_vm7, %vm811_vm2  ;;  %vm758_vm7 = vcmp.eq.s32.totalorder %v681_v49, 8  ;;  %vm844_vm2 = vcmp.eq.s32.totalorder %v789_v46, 1  ;;  %v2626_v20 = vmov 0 }
  0x47   : > { %vm1988_vm14 = vmand %vm801_vm11, %vm812_vm3  ;;  %vm2621_vm11 = vnez %v2553_v26  ;;  %v661_v21 = vshra.s32 %v650_v2, 11  ;;  %v2636_v45 = vmov 0  ;;  %v2644_v25 = vmov 0 }
  0x48   : > { %v2616_v6 = vsel %vm1988_vm14, 4294967295, %v2615_v6  ;;  %vm1994_vm8 = vmand %vm714_vm4, %vm725_vm10  ;;  %vm2625_vm14 = vcmp.eq.s32.totalorder %v1762_v11, 8  ;;  %v2633_v11 = vmov 0  ;;  %v662_v26 = vshra.s32 %v651_v12, 11 }
  0x49   : > { %v2618_v16 = vsel %vm1994_vm8, 4294967295, %v2617_v16  ;;  %vm2622_vm3 = vmor %vm2620_vm0, %vm2621_vm11  ;;  %vm2043_vm11 = vcmp.eq.s32.totalorder %v791_v5, 0  ;;  %vm2641_vm8 = vnez %v2600_v40  ;;  %v638_v27 = vsub.s32 %v1644_v39, %v627_v15 }
  0x4a   : > { %vm2006_vm15 = vmor %vm2622_vm3, %vm2619_vm9  ;;  %vm813_vm3 = vcmp.eq.s32.totalorder %v637_v3, 0  ;;  %vm2640_vm9 = vnez %v2616_v6  ;;  %v792_v32 = vand.u32 1, %v704_v9  ;;  %v672_v34 = vmul.u32 9, %v661_v21 }
  0x4b   : > { %v2624_v18 = vsel %vm2006_vm15, 4294967295, %v2623_v18  ;;  %vm2014_vm10 = vmand %vm1962_vm12, %vm2625_vm14  ;;  %v694_v13 = vmul.u32 1619, %v1776_v23  ;;  %v2652_v38 = vmov 0  ;;  %v673_v41 = vmul.u32 9, %v662_v26 }
  0x4c   : > { %v2627_v20 = vsel %vm2014_vm10, 4294967295, %v2626_v20  ;;  %vm2018_vm4 = vmand %vm747_vm6, %vm758_vm7  ;;  %vm2635_vm6 = vcmp.eq.s32.totalorder %v1827_v22, 8  ;;  %vm2651_vm10 = vcmp.lt.s32.totalorder %v704_v9, 2  ;;  %v695_v33 = vmul.u32 1619, %v1801_v37 }
  0x4d   : > { %vm2632_vm12 = vmor %vm1863_vm1, %vm1913_vm5  ;;  %vm2642_vm5 = vnez %v2604_v61  ;;  %v2658_v42 = vmov 0  ;;  %v2661_v44 = vmov 0  ;;  %v683_v22 = vsub.s32 %v1920_v57, %v672_v34 }
  0x4e   : > { %vm2033_vm14 = vmor %vm2632_vm12, %vm1974_vm13  ;;  %vm726_vm12 = vcmp.eq.s32.totalorder %v682_v7, 0  ;;  %v2103_v46 = vshra.s32 %v694_v13, 19  ;;  %v628_v28 = vmul.u32 9, %v1920_v57  ;;  %v684_v35 = vsub.s32 %v1943_v0, %v673_v41 }
  0x4f   : > { %v2634_v11 = vsel %vm2033_vm14, 4294967295, %v2633_v11  ;;  %vm2039_vm7 = vmand %vm844_vm2, %vm2635_vm6  ;;  %vm845_vm2 = vcmp.eq.s32.totalorder %v790_v55, 1  ;;  %v2111_v10 = vshra.s32 %v695_v33, 19  ;;  %v2666_v52 = vmov 0 }
  0x50   : > { %v2637_v45 = vsel %vm2039_vm7, 4294967295, %v2636_v45  ;;  %vm2643_vm1 = vmor %vm2641_vm8, %vm2642_vm5  ;;  %vm2650_vm8 = vnez %v2618_v16  ;;  %vm748_vm5 = vcmp.ge.s32.totalorder %v704_v9, 2  ;;  %v629_v55 = vmul.u32 9, %v1943_v0 }
  0x51   : > { %vm2054_vm13 = vmor %vm2643_vm1, %vm2640_vm9  ;;  %vm759_vm1 = vcmp.eq.s32.totalorder %v682_v7, 8  ;;  %vm2121_vm9 = vcmp.eq.s32.totalorder %v792_v32, 1  ;;  %v793_v50 = vand.u32 1, %v2103_v46  ;;  %v794_v31 = vand.u32 1, %v2111_v10 }
  0x52   : > { %v2645_v25 = vsel %vm2054_vm13, 4294967295, %v2644_v25  ;;  %vm856_vm13 = vcmp.eq.s32.totalorder %v1868_v53, 8  ;;  %vm824_vm7 = vmand %vm2043_vm11, %vm813_vm3  ;;  %vm814_vm3 = vcmp.eq.s32.totalorder %v638_v27, 0  ;;  %v2668_v53 = vmov 0 }
  0x53   : > { %vm2076_vm0 = vmand %vm2651_vm10, %vm726_vm12  ;;  %vm803_vm10 = vcmp.eq.s32.totalorder %v792_v32, 0  ;;  %v2669_v53 = vsel %vm2121_vm9, 4294967295, %v2668_v53  ;;  %vm2679_vm9 = vnez %v2576_v56  ;;  %v2687_v56 = vmov 0 }
  0x54   : > { %v2653_v38 = vsel %vm2076_vm0, 4294967295, %v2652_v38  ;;  %vm2084_vm14 = vmand %vm748_vm5, %vm759_vm1  ;;  %vm846_vm5 = vcmp.eq.s32.totalorder %v791_v5, 1  ;;  %vm857_vm1 = vcmp.eq.s32.totalorder %v637_v3, 8  ;;  %v2708_v5 = vmov 0 }
  0x55   : > { %vm2089_vm11 = vmand %vm845_vm2, %vm856_vm13  ;;  %vm2663_vm13 = vnez %v2653_v38 }
  0x56   : > { %v2659_v42 = vsel %vm2089_vm11, 4294967295, %v2658_v42  ;;  %vm2660_vm12 = vmor %vm2650_vm8, %vm2018_vm4  ;;  %vm2673_vm8 = vnez %v2637_v45  ;;  %vm2680_vm4 = vnez %v2580_v60 }
  0x57   : > { %vm2098_vm0 = vmor %vm2660_vm12, %vm824_vm7 }
  0x58   : > { %v2662_v44 = vsel %vm2098_vm0, 4294967295, %v2661_v44  ;;  %vm825_vm6 = vmand %vm803_vm10, %vm814_vm3  ;;  %vm2670_vm10 = vnez %v2560_v48  ;;  %vm2671_vm3 = vnez %v2564_v54  ;;  %v2677_v48 = vmov 0 }
  0x59   : > { %vm2117_vm12 = vmand %vm846_vm5, %vm857_vm1  ;;  %vm2674_vm5 = vnez %v2634_v11  ;;  %v2153_v54 = vsub.s32 %v1776_v23, %v628_v28  ;;  %vm2686_vm1 = vnez %v2669_v53  ;;  %v1179_v28 = vcombine.low %v1523_v14, %v1523_v14 }
  0x5a   : > { %v2667_v52 = vsel %vm2117_vm12, 4294967295, %v2666_v52  ;;  %vm2672_vm15 = vmor %vm2670_vm10, %vm2671_vm3  ;;  %vm2685_vm3 = vcmp.eq.s32.totalorder %v638_v27, 8 }
  0x5b   : > { %v883_v43 = vsel %vm2672_vm15, 1, %v1461_v4  ;;  %vm2676_vm15 = vmor %vm2663_vm13, %vm2084_vm14  ;;  %vm2682_vm14 = vnez %v2586_v36 }
  0x5c   : > { %vm2148_vm10 = vmor %vm2676_vm15, %vm825_vm6  ;;  %vm2683_vm6 = vnez %v2590_v17  ;;  %v2189_v17 = vsub.s32 %v1801_v37, %v629_v55  ;;  %vm2693_vm15 = vcmp.eq.s32.totalorder %v683_v22, 8  ;;  %vm2712_vm2 = vcmp.eq.s32.totalorder %v883_v43, 1 }
  0x5d   : > { %v2678_v48 = vsel %vm2148_vm10, 4294967295, %v2677_v48  ;;  %vm2681_vm7 = vmor %vm2679_vm9, %vm2680_vm4  ;;  %vm2694_vm9 = vcmp.ge.s32.totalorder %v2103_v46, 2 }
  0x5e   : > { %v884_v57 = vsel %vm2681_vm7, 1, %v1461_v4  ;;  %vm2684_vm13 = vmor %vm2682_vm14, %vm2683_vm6  ;;  %vm2689_vm7 = vcmp.eq.s32.totalorder %v683_v22, 0  ;;  %vm2690_vm14 = vcmp.lt.s32.totalorder %v2103_v46, 2 }
  0x5f   : > { %v885_v23 = vsel %vm2684_vm13, 1, %v1461_v4  ;;  %vm2176_vm11 = vmand %vm2686_vm1, %vm2685_vm3  ;;  %vm2208_vm3 = vcmp.eq.s32.totalorder %v793_v50, 0  ;;  %vm2703_vm1 = vcmp.lt.s32.totalorder %v2111_v10, 2 }
  0x60   : > { %v2688_v56 = vsel %vm2176_vm11, 4294967295, %v2687_v56  ;;  %vm2184_vm6 = vmand %vm2690_vm14, %vm2689_vm7  ;;  %vm2697_vm7 = vnez %v2607_v47  ;;  %vm2698_vm14 = vnez %v2610_v59  ;;  %vm2716_vm11 = vcmp.eq.s32.totalorder %v884_v57, 1 }
  0x61   : > { %vm2197_vm4 = vmand %vm2694_vm9, %vm2693_vm15  ;;  %vm2702_vm9 = vcmp.eq.s32.totalorder %v684_v35, 0 }
  0x62   : > { %vm2699_vm13 = vmor %vm2697_vm7, %vm2698_vm14  ;;  %vm2706_vm7 = vcmp.eq.s32.totalorder %v684_v35, 8  ;;  %vm2707_vm14 = vcmp.ge.s32.totalorder %v2111_v10, 2 }
  0x63   : > { %v886_v0 = vsel %vm2699_vm13, 1, %v1461_v4  ;;  %vm2216_vm12 = vmand %vm2703_vm1, %vm2702_vm9  ;;  %vm2237_vm9 = vcmp.eq.s32.totalorder %v794_v31, 0  ;;  %vm2255_vm13 = vcmp.eq.s32.totalorder %v793_v50, 1  ;;  %vm2721_vm1 = vnez %v2627_v20 }
  0x64   : > { %vm2228_vm15 = vmand %vm2707_vm14, %vm2706_vm7  ;;  %vm897_vm7 = vcmp.eq.s32.totalorder %v886_v0, 1  ;;  %vm2713_vm14 = vcmp.eq.s32.totalorder %v2153_v54, 0 }
  0x65   : > { %v2709_v5 = vsel %vm2228_vm15, 4294967295, %v2708_v5  ;;  %vm2247_vm0 = vmand %vm2208_vm3, %vm2713_vm14  ;;  %vm2719_vm3 = vcmp.eq.s32.totalorder %v885_v23, 1  ;;  %vm2720_vm14 = vnez %v2624_v18 }
  0x66   : > { %vm2723_vm10 = vmor %vm2674_vm5, %vm2673_vm8 }
  0x67   : > { %v888_v39 = vsel %vm2723_vm10, 1, %v1461_v4  ;;  %vm2727_vm8 = vmor %vm2184_vm6, %vm2197_vm4  ;;  %vm2299_vm10 = vcmp.eq.s32.totalorder %v794_v31, 1  ;;  %vm2735_vm6 = vcmp.eq.s32.totalorder %v2153_v54, 8 }
  0x68   : > { %vm2295_vm5 = vmor %vm2727_vm8, %vm2247_vm0  ;;  %vm2733_vm0 = vnez %v2659_v42 }
  0x87   : > { %v2137_v49 = vpop.permute.xlu0 %235 }
  0xed   : > { %v363_v60 = vpop.f32.mrb[0].mxu0 }
  0xee   : > { %v364_v40 = vadd.f32 %v363_v60, %v2137_v49  ;;  %v365_v58 = vpop.f32.mrb[1].mxu0 }
  0xef   : > { %v366_v62 = vadd.f32 %v365_v58, %v2137_v49  ;;  %v367_v37 = vpop.f32.mrb[2].mxu0  ;;  %v404_v63 = vpop.f32.mrb[0].mxu1 }
  0xf0   : > { %v574_v2 = vmax.f32 %v364_v40, 0.0  ;;  %v405_v47 = vadd.f32 %v404_v63, %v2137_v49  ;;  %v368_v59 = vpop.f32.mrb[3].mxu0  ;;  %v406_v3 = vpop.f32.mrb[1].mxu1 }
  0xf1   : > { %v575_v6 = vmax.f32 %v366_v62, 0.0  ;;  %v407_v7 = vadd.f32 %v406_v3, %v2137_v49  ;;  %v408_v9 = vpop.f32.mrb[2].mxu1 }
  0xf2   : > { %v905_v16 = vsel %vm2712_vm2, 0.0, %v574_v2  ;;  %v576_v15 = vmax.f32 %v405_v47, 0.0  ;;  %v409_v8 = vpop.f32.mrb[3].mxu1  ;;  %vm2724_vm2 = vcmp.eq.s32.totalorder %v2189_v17, 0 }
  0xf3   : > { %v2252_v24 = vpack.c.bf16 %v905_v16, %v905_v16  ;;  %v906_v26 = vsel %vm2716_vm11, 0.0, %v575_v6  ;;  %v577_v27 = vmax.f32 %v407_v7, 0.0  ;;  %vm2722_vm11 = vmor %vm2720_vm14, %vm2721_vm1  ;;  %vm860_vm1 = vcmp.eq.s32.totalorder %v2189_v17, 8 }
  0xf4   : > { %v2263_v34 = vpack.c.bf16 %v906_v26, %v906_v26  ;;  %v907_v13 = vsel %vm2719_vm3, 0.0, %v576_v15  ;;  %v887_v38 = vsel %vm2722_vm11, 1, %v1461_v4  ;;  %vm2282_vm15 = vmand %vm2237_vm9, %vm2724_vm2  ;;  %vm2732_vm9 = vnez %v2645_v25 }
  0xf5   : > { %v908_v18 = vsel %vm897_vm7, 0.0, %v577_v27  ;;  %v445_v33 = vpop.f32.mrb[4].mxu0  ;;  %949 = vrot.lane.b32.xlu1 %v2252_v24, %s1464_s28  ;;  %vm2734_vm4 = vmor %vm2732_vm9, %vm2733_vm0  ;;  %vm898_vm2 = vcmp.eq.s32.totalorder %v887_v38, 1  ;;  %vm899_vm3 = vcmp.eq.s32.totalorder %v888_v39, 1  ;;  %vm2738_vm14 = vnez %v2662_v44 }
  0xf6   : > { %v446_v45 = vadd.f32 %v445_v33, %v2137_v49  ;;  %v447_v22 = vpop.f32.mrb[5].mxu0  ;;  %951 = vrot.lane.b32.xlu0 %v2263_v34, %s1464_s28  ;;  %v889_v46 = vsel %vm2734_vm4, 1, %v1461_v4  ;;  %vm2317_vm7 = vmand %vm2255_vm13, %vm2735_vm6  ;;  %vm2739_vm11 = vnez %v2667_v52  ;;  %vm2741_vm13 = vnez %v2709_v5 }
  0xf7   : > { %v448_v35 = vadd.f32 %v447_v22, %v2137_v49  ;;  %v486_v10 = vpop.f32.mrb[4].mxu1  ;;  %vm2740_vm8 = vmor %vm2738_vm14, %vm2739_vm11  ;;  %v449_v42 = vpop.f32.mrb[6].mxu0  ;;  %v2339_v55 = vpack.c.bf16 %v907_v13, %v907_v13  ;;  %v919_v43 = vpack.c.bf16 %v908_v18, %v908_v18  ;;  %vm2748_vm6 = vnez %v2688_v56 }
  0xf8   : > { %v890_v25 = vsel %vm2740_vm8, 1, %v1461_v4  ;;  %vm2742_vm9 = vmor %vm2216_vm12, %vm2741_vm13  ;;  %v578_v44 = vmax.f32 %v446_v45, 0.0  ;;  %v487_v52 = vadd.f32 %v486_v10, %v2137_v49  ;;  %v488_v54 = vpop.f32.mrb[5].mxu1  ;;  %v450_v50 = vpop.f32.mrb[7].mxu0  ;;  %vm900_vm12 = vcmp.eq.s32.totalorder %v889_v46, 1  ;;  %v230_v46 = vld [vmem:[%s2476_s4 + $0x8] sm:$0xff] }
  0xf9   : > { %vm2335_vm0 = vmor %vm2742_vm9, %vm2282_vm15  ;;  %v579_v23 = vmax.f32 %v448_v35, 0.0  ;;  %v489_v60 = vadd.f32 %v488_v54, %v2137_v49  ;;  %997 = vrot.lane.b32.xlu1 %v2263_v34, %s1465_s29  ;;  %v490_v36 = vpop.f32.mrb[6].mxu1  ;;  %v932_v37 = vrot.slane %v919_v43, 4  ;;  %v931_v5 = vrot.slane %v2339_v55, 4 }
  0xfa   : > { %vm2346_vm4 = vmand %vm2299_vm10, %vm860_vm1  ;;  %v909_v17 = vsel %vm898_vm2, 0.0, %v578_v44  ;;  %v580_v31 = vmax.f32 %v487_v52, 0.0  ;;  %vm901_vm10 = vcmp.eq.s32.totalorder %v890_v25, 1  ;;  %999 = vrot.lane.b32.xlu0 %v2339_v55, %s1465_s29  ;;  %v491_v40 = vpop.f32.mrb[7].mxu1  ;;  %vm2747_vm1 = vnez %v2678_v48 }
  0xfb   : > { %vm881_vm15 = vmor %vm2295_vm5, %vm2317_vm7  ;;  %v910_v58 = vsel %vm899_vm3, 0.0, %v579_v23  ;;  %v581_v61 = vmax.f32 %v489_v60, 0.0  ;;  %v920_v63 = vpack.c.bf16 %v909_v17, %v909_v17  ;;  %v1180_v35 = vcombine.low %v1549_v30, %v1549_v30 }
  0xfc   : > { %vm2749_vm14 = vmor %vm2747_vm1, %vm2748_vm6  ;;  %v911_v0 = vsel %vm900_vm12, 0.0, %v580_v31  ;;  %v892_v1 = vsel %vm881_vm15, 1, %v1461_v4  ;;  %v921_v9 = vpack.c.bf16 %v910_v58, %v910_v58  ;;  %vm943_vm11 = vcmask 490496  }
  0xfd   : > { %v891_v62 = vsel %vm2749_vm14, 1, %v1461_v4  ;;  %vm882_vm5 = vmor %vm2335_vm0, %vm2346_vm4  ;;  %v912_v51 = vsel %vm901_vm10, 0.0, %v581_v61  ;;  %v527_v2 = vpop.f32.mrb[8].mxu0  ;;  %953 = vrot.lane.b32.xlu1 %v2339_v55, %s1464_s28  ;;  %vm903_vm2 = vcmp.eq.s32.totalorder %v892_v1, 1  ;;  %v933_v7 = vrot.slane %v920_v63, 4 }
  0xfe   : > { %v528_v48 = vadd.f32 %v527_v2, %v2137_v49  ;;  %v529_v56 = vpop.f32.mrb[9].mxu0  ;;  %937 = vrot.lane.b32.xlu0 %v932_v37, %s1466_s30  ;;  %v893_v47 = vsel %vm882_vm5, 1, %v1461_v4  ;;  %vm902_vm7 = vcmp.eq.s32.totalorder %v891_v62, 1  ;;  %v934_v39 = vrot.slane %v921_v9, 4 }
  0xff   : > { %v530_v59 = vadd.f32 %v529_v56, %v2137_v49  ;;  %v568_v3 = vpop.f32.mrb[8].mxu1  ;;  %v531_v6 = vpop.f32.mrb[10].mxu0  ;;  %vm904_vm3 = vcmp.eq.s32.totalorder %v893_v47, 1  ;;  %v923_v18 = vpack.c.bf16 %v912_v51, %v912_v51  ;;  %vm1024_vm8 = vcmask 1043456  }
 0x100   : > { %v582_v12 = vmax.f32 %v528_v48, 0.0  ;;  %v569_v16 = vadd.f32 %v568_v3, %v2137_v49  ;;  %v532_v15 = vpop.f32.mrb[11].mxu0  ;;  %v1404_v8 = vpop.f32.mrb[9].mxu1  ;;  %v922_v49 = vpack.c.bf16 %v911_v0, %v911_v0  ;;  %vm968_vm13 = vcmask 982016  }
 0x101   : > { %v583_v21 = vmax.f32 %v530_v59, 0.0  ;;  %935 = vrot.lane.b32.xlu1 %v931_v5, %s1466_s30  ;;  %v571_v26 = vpop.f32.mrb[10].mxu1  ;;  %v961_v20 = vrot.slane %v923_v18, 4  ;;  %vm955_vm9 = vcmask 1039360   ;;  %vm982_vm0 = vcmask 424960  }
 0x102   : > { %v913_v27 = vsel %vm902_vm7, 0.0, %v582_v12  ;;  %v584_v32 = vmax.f32 %v569_v16, 0.0  ;;  %1007 = vrot.lane.b32.xlu0 %v933_v7, %s1467_s6  ;;  %v1405_v13 = vpop.f32.mrb[11].mxu1  ;;  %v960_v33 = vrot.slane %v922_v49, 4  ;;  %vm1011_vm4 = vcmask 416768  }
 0x103   : > { %v914_v38 = vsel %vm903_vm2, 0.0, %v583_v21  ;;  %v924_v11 = vpack.c.bf16 %v913_v27, %v913_v27  ;;  %vm992_vm12 = vcmask 973824   ;;  %vm1021_vm15 = vcmask 965632  }
 0x104   : > { %v915_v41 = vsel %vm904_vm3, 0.0, %v584_v32  ;;  %v925_v45 = vpack.c.bf16 %v914_v38, %v914_v38  ;;  %vm1079_vm10 = vcmask 588800   ;;  %vm2750_vm1 = vmmov 0  }
 0x105   : > { %1005 = vrot.lane.b32.xlu1 %v932_v37, %s1467_s6  ;;  %v926_v22 = vpack.c.bf16 %v915_v41, %v915_v41  ;;  %vm1211_vm6 = vcmask 1045504   ;;  %vm1207_vm14 = vcmask 97280   ;;  %vm1307_vm5 = vcmask 551936  }
 0x106   : > { %941 = vrot.lane.b32.xlu0 %v934_v39, %s1466_s30 }
 0x109   : > { %939 = vrot.lane.b32.xlu1 %v933_v7, %s1466_s30 }
 0x10a   : > { %962 = vrot.lane.b32.xlu0 %v934_v39, %s1468_s7 }
 0x10d   : > { %974 = vrot.lane.b32.xlu1 %v923_v18, %s1469_s8 }
 0x10e   : > { %986 = vrot.lane.b32.xlu0 %v934_v39, %s1465_s29 }
 0x111   : > { %988 = vrot.lane.b32.xlu1 %v960_v33, %s1465_s29 }
 0x112   : > { %964 = vrot.lane.b32.xlu0 %v960_v33, %s1468_s7 }
 0x115   : > { %966 = vrot.lane.b32.xlu1 %v961_v20, %s1468_s7 }
 0x116   : > { %990 = vrot.lane.b32.xlu0 %v961_v20, %s1465_s29 }
 0x119   : > { %976 = vrot.lane.b32.xlu1 %v924_v11, %s1469_s8 }
 0x11a   : > { %978 = vrot.lane.b32.xlu0 %v925_v45, %s1469_s8 }
 0x11d   : > { %1003 = vrot.lane.b32.xlu1 %v931_v5, %s1467_s6 }
 0x11e   : > { %995 = vrot.lane.b32.xlu0 %v2252_v24, %s1465_s29 }
 0x121   : > { %1015 = vrot.lane.b32.xlu1 %v2252_v24, %s1470_s9 }
 0x122   : > { %1009 = vrot.lane.b32.xlu0 %v934_v39, %s1467_s6 }
 0x125   : > { %980 = vrot.lane.b32.xlu1 %v926_v22, %s1469_s8 }
 0x126   : > { %1017 = vrot.lane.b32.xlu0 %v2263_v34, %s1470_s9 }
 0x129   : > { %1019 = vrot.lane.b32.xlu1 %v2339_v55, %s1470_s9 }
 0x12a   : > { %1076 = vperm.xlu0 %1447, %v230_v46   ;;  %v1073_v46 = vld [vmem:[%s2474_s2] sm:$0xf] }
 0x12d   : > { %1181 = vrot.lane.b32.xlu1 %v1526_v19, %s1469_s8 }
 0x12e   : > { %1183 = vrot.lane.b32.xlu0 %v1179_v28, %s1469_s8 }
 0x131   : > { %1185 = vrot.lane.b32.xlu1 %v1523_v14, %s1469_s8 }
 0x132   : > { %1187 = vrot.lane.b32.xlu0 %v1180_v35, %s1469_s8  ;;  %v231_v35 = vld [vmem:[%s2476_s4 + $0x10] sm:$0xf] }
 0x135   : > { %1204 = vperm.xlu1 %1448, %v231_v35  }
 0x167   : > { %v950_v10 = vpop.permute.xlu1 %949 }
 0x168   : > { %v952_v25 = vpop.permute.xlu0 %951 }
 0x169   : > { %v956_v51 = vsel %vm955_vm9, %v950_v10, %v952_v25 }
 0x16b   : > { %v998_v42 = vpop.permute.xlu1 %997 }
 0x16c   : > { %v2403_v53 = vpop.permute.xlu0 %999 }
 0x16d   : > { %v1002_v9 = vsel %vm992_vm12, %v998_v42, %v2403_v53 }
 0x16f   : > { %v954_v43 = vpop.permute.xlu1 %953 }
 0x170   : > { %v938_v44 = vpop.permute.xlu0 %937 }
 0x173   : > { %v936_v52 = vpop.permute.xlu1 %935 }
 0x174   : > { %v2405_v54 = vpop.permute.xlu0 %1007  ;;  %v944_v57 = vsel %vm943_vm11, %v936_v52, %v938_v44 }
 0x175   : > { %v1027_v31 = vsel %vm1024_vm8, %v2252_v24, %v944_v57 }
 0x177   : > { %v1006_v50 = vpop.permute.xlu1 %1005 }
 0x178   : > { %v942_v19 = vpop.permute.xlu0 %941  ;;  %v1013_v59 = vsel %vm1011_vm4, %v1006_v50, %v2405_v54 }
 0x179   : > { %v1067_v21 = vsel %vm1024_vm8, %v1002_v9, %v1013_v59 }
 0x17b   : > { %v940_v23 = vpop.permute.xlu1 %939 }
 0x17c   : > { %v945_v30 = vsel %vm943_vm11, %v938_v44, %v940_v23  ;;  %v946_v60 = vsel %vm943_vm11, %v940_v23, %v942_v19  ;;  %v963_v14 = vpop.permute.xlu0 %962 }
 0x17d   : > { %v1031_v36 = vsel %vm1024_vm8, %v2263_v34, %v945_v30  ;;  %v1035_v17 = vsel %vm1024_vm8, %v2339_v55, %v946_v60  ;;  %v957_v34 = vsel %vm955_vm9, %v952_v25, %v954_v43 }
 0x17e   : > { %1092 = vmatprep.subr.bf16.mxu0 %v1031_v36  ;;  %1407 = vmatpush3.bf16.msra.mxu1 %v1035_v17 }
 0x17f   : > { %1093 = vmatpush1.bf16.msra.mxu0 %v1027_v31  ;;  %v975_v40 = vpop.permute.xlu1 %974  ;;  %1408 = vmatprep.subr.bf16.mxu1 %v1462_v29 }
 0x180   : > { %v987_v58 = vpop.permute.xlu0 %986 }
 0x183   : > { %v989_v61 = vpop.permute.xlu1 %988 }
 0x184   : > { %v965_v62 = vpop.permute.xlu0 %964  ;;  %v993_v6 = vsel %vm992_vm12, %v987_v58, %v989_v61 }
 0x185   : > { %v969_v37 = vsel %vm968_vm13, %v963_v14, %v965_v62 }
 0x186   : > { %v1039_v2 = vsel %vm1024_vm8, %v956_v51, %v969_v37 }
 0x187   : > { %v967_v63 = vpop.permute.xlu1 %966 }
 0x188   : > { %v970_v0 = vsel %vm968_vm13, %v965_v62, %v967_v63  ;;  %v1047_v55 = vsel %vm1024_vm8, %v954_v43, %v967_v63  ;;  %v991_v1 = vpop.permute.xlu0 %990 }
 0x189   : > { %1409 = vmatpush3.bf16.msra.mxu1 %v1047_v55  ;;  %v1043_v24 = vsel %vm1024_vm8, %v957_v34, %v970_v0  ;;  %v994_v3 = vsel %vm992_vm12, %v989_v61, %v991_v1  ;;  %v1201_v55 = vld [vmem:[%s2475_s3] sm:$0x3] }
 0x18a   : > { %1094 = vmatprep.subr.bf16.mxu0 %v1043_v24  ;;  %1410 = vmatprep.subr.bf16.mxu1 %v1462_v29 }
 0x18b   : > { %1095 = vmatpush1.bf16.msra.mxu0 %v1039_v2  ;;  %v977_v48 = vpop.permute.xlu1 %976 }
 0x18c   : > { %v983_v56 = vsel %vm982_vm0, %v975_v40, %v977_v48  ;;  %v979_v47 = vpop.permute.xlu0 %978 }
 0x18d   : > { %v984_v5 = vsel %vm982_vm0, %v977_v48, %v979_v47  ;;  %v1051_v16 = vsel %vm1024_vm8, %v983_v56, %v993_v6 }
 0x18e   : > { %v1055_v7 = vsel %vm1024_vm8, %v984_v5, %v994_v3 }
 0x18f   : > { %1096 = vmatprep.subr.bf16.mxu0 %v1055_v7  ;;  %v1004_v12 = vpop.permute.xlu1 %1003 }
 0x190   : > { %v1012_v15 = vsel %vm1011_vm4, %v1004_v12, %v1006_v50  ;;  %v996_v8 = vpop.permute.xlu0 %995  ;;  %1097 = vmatpush1.bf16.msra.mxu0 %v1051_v16 }
 0x191   : > { %v1001_v26 = vsel %vm992_vm12, %v996_v8, %v998_v42  ;;  %1098 = vmatprep.subr.bf16.mxu0 %v1067_v21 }
 0x192   : > { %v1063_v27 = vsel %vm1024_vm8, %v1001_v26, %v1012_v15 }
 0x193   : > { %v1016_v32 = vpop.permute.xlu1 %1015 }
 0x194   : > { %v1010_v13 = vpop.permute.xlu0 %1009  ;;  %1099 = vmatpush1.bf16.msra.mxu0 %v1063_v27 }
 0x195   : > { %v1014_v18 = vsel %vm1011_vm4, %v2405_v54, %v1010_v13 }
 0x196   : > { %v1071_v22 = vsel %vm1024_vm8, %v2403_v53, %v1014_v18 }
 0x197   : > { %v981_v38 = vpop.permute.xlu1 %980 }
 0x198   : > { %v985_v39 = vsel %vm982_vm0, %v979_v47, %v981_v38  ;;  %v1018_v41 = vpop.permute.xlu0 %1017 }
 0x199   : > { %v1059_v49 = vsel %vm1024_vm8, %v985_v39, %v991_v1  ;;  %v1022_v33 = vsel %vm1021_vm15, %v1016_v32, %v1018_v41 }
 0x19a   : > { %1411 = vmatpush3.bf16.msra.mxu1 %v1059_v49  ;;  %v1084_v45 = vsel %vm1024_vm8, %v1022_v33, 0 }
 0x19b   : > { %v1020_v20 = vpop.permute.xlu1 %1019  ;;  %1412 = vmatprep.subr.bf16.mxu1 %v1462_v29 }
 0x19c   : > { %v1023_v11 = vsel %vm1021_vm15, %v1018_v41, %v1020_v20  ;;  %v1090_v28 = vsel %vm1024_vm8, %v1020_v20, 0 }
 0x19d   : > { %1382 = vmatprep.subr.msk.bf16.mxu0 %vm1024_vm8, %v1023_v11 }
 0x19e   : > { %1101 = vmatpush1.bf16.msra.mxu0 %v1084_v45  ;;  %1413 = vmatpush3.bf16.msra.mxu1 %v1071_v22 }
 0x19f   : > { %1414 = vmatprep.subr.bf16.mxu1 %v1462_v29  ;;  %v1182_v10 = vpop.permute.xlu1 %1181 }
 0x1a1   : > { %1383 = vmatmul.mubr.msk.bf16.vlgmr.msra.gmra.mrb[12].mxu0 %vm1079_vm10, %v1073_v46 }
 0x1a2   : > { %1415 = vmatpush3.bf16.msra.mxu1 %v1090_v28  ;;  %1250 = vmatprep.mubr.bf16.mxu0 %v1461_v4 }
 0x1a3   : > { %1420 = vmatprep.subr.bf16.mxu1 %v1462_v29  ;;  %v1186_v4 = vpop.permute.xlu1 %1185 }
 0x1a5   : > { %1417 = vmatmul.mubr.msk.bf16.vlgmr.msra.gmra.mrb[12].mxu1 %vm1079_vm10, %v1073_v46 }
 0x1a6   : > { %1422 = vmatprep.mubr.msk.bf16.mxu1 %vm2750_vm1, %v1462_v29 }
 0x1a9   : > { %v1077_v25 = vpop.permute.xlu0 %1076 }
 0x1ad   : > { %v1184_v44 = vpop.permute.xlu0 %1183 }
 0x1ae   : > { %v1190_v14 = vsel %vm982_vm0, %v1184_v44, %v1186_v4  ;;  %v1189_v17 = vsel %vm982_vm0, %v1182_v10, %v1184_v44 }
 0x1b1   : > { %v1188_v61 = vpop.permute.xlu0 %1187 }
 0x1b2   : > { %v1191_v0 = vsel %vm982_vm0, %v1186_v4, %v1188_v61 }
 0x1b4   : > { %v1205_v24 = vpop.permute.xlu1 %1204 }
 0x274   : > { %v1126_v42 = vpop.f32.mrb[12].mxu0 }
 0x275   : > { %v1127_v53 = vadd.f32 %v1126_v42, %v1077_v25  ;;  %v1128_v43 = vpop.f32.mrb[13].mxu0 }
 0x276   : > { %v1129_v52 = vadd.f32 %v1128_v43, %v1077_v25  ;;  %v1130_v54 = vpop.f32.mrb[14].mxu0 }
 0x277   : > { %v1173_v50 = vmax.f32 %v1127_v53, 0.0  ;;  %v1131_v19 = vpop.f32.mrb[15].mxu0 }
 0x278   : > { %v1174_v57 = vmax.f32 %v1129_v52, 0.0  ;;  %v1167_v23 = vpop.f32.mrb[12].mxu1 }
 0x279   : > { %v1176_v30 = vpack.c.bf16 %v1173_v50, %v1173_v50  ;;  %v1168_v29 = vadd.f32 %v1167_v23, %v1077_v25  ;;  %v1418_v60 = vpop.f32.mrb[13].mxu1 }
 0x27a   : > { %v1177_v36 = vpack.c.bf16 %v1174_v57, %v1174_v57  ;;  %v1170_v31 = vpop.f32.mrb[14].mxu1 }
 0x27b   : > { %v1194_v40 = vsel %vm1024_vm8, %v1176_v30, %v1189_v17  ;;  %v1175_v58 = vmax.f32 %v1168_v29, 0.0  ;;  %v1419_v62 = vpop.f32.mrb[15].mxu1 }
 0x27c   : > { %v1197_v37 = vsel %vm1024_vm8, %v1177_v36, %v1190_v14  ;;  %v1212_v63 = vsel %vm1211_vm6, %v1194_v40, 0 }
 0x27d   : > { %v1178_v34 = vpack.c.bf16 %v1175_v58, %v1175_v58  ;;  %1385 = vmatprep.subr.msk.bf16.mxu0 %vm1211_vm6, %v1197_v37 }
 0x27e   : > { %1219 = vmatpush1.bf16.msra.mxu0 %v1212_v63 }
 0x27f   : > { %v1200_v1 = vsel %vm1024_vm8, %v1178_v34, %v1191_v0 }
 0x280   : > { %v1216_v51 = vsel %vm1211_vm6, %v1200_v1, 0 }
 0x281   : > { %1421 = vmatpush3.bf16.msra.mxu1 %v1216_v51  ;;  %1386 = vmatmul.mubr.msk.bf16.vlgmr.msra.gmra.mrb[16].mxu0 %vm1207_vm14, %v1201_v55 }
 0x284   : > { %1423 = vmatmul.mubr.msk.bf16.vlgmr.msra.gmra.mrb[16].mxu1 %vm1207_vm14, %v1201_v55 }
 0x354   : > { %v1252_v2 = vpop.f32.mrb[16].mxu0 }
 0x355   : > { %v1254_v48 = vpop.f32.mrb[17].mxu0  ;;  %v1253_v56 = vadd.f32 %v1252_v2, %v1205_v24 }
 0x356   : > { %v1256_v47 = vpop.f32.mrb[18].mxu0  ;;  %v1255_v59 = vadd.f32 %v1254_v48, %v1205_v24 }
 0x357   : > { %v1257_v3 = vpop.f32.mrb[19].mxu0  ;;  %v1293_v5 = vpop.f32.mrb[16].mxu1  ;;  %v1299_v6 = vmax.f32 %v1253_v56, 0.0 }
 0x358   : > { %v1294_v7 = vadd.f32 %v1293_v5, %v1205_v24  ;;  %v1300_v9 = vmax.f32 %v1255_v59, 0.0  ;;  %v1424_v12 = vpop.f32.mrb[17].mxu1 }
 0x359   : > { %v1296_v16 = vpop.f32.mrb[18].mxu1 }
 0x35a   : > { %v1301_v15 = vmax.f32 %v1294_v7, 0.0  ;;  %v1304_v8 = vcombine.low %v1299_v6, %v1300_v9  ;;  %v1425_v21 = vpop.f32.mrb[19].mxu1 }
 0x35c   : > { %1306 = vst [vmem:[%s224_s23] sm:$0xff] %v1304_v8  ;;  %1308 = vst.msk [vmem:[%s224_s23 + $0x8] sm:$0xf] %vm1307_vm5, %v1301_v15 }
 0x35d PF: > { %s15_s18 = sadd.s32 1, %s1458_s18  }
 0x35e   : > { %p12_p4 = scmp.ge.s32.totalorder %s15_s18, 4  }
 0x360   :  { %14 = sbr.rel (!%p12_p4) target bundleno = 1 (0x1), region = 70 }

</bundles_post_ra>
